<compile_context>
chip_gen: v7x
topology: tpu7x:2x2x1
jax: 0.10.0
libtpu: 0.0.40
codegen_flags: <defaults>
</compile_context>

<pallas_src>
import math
import functools

import jax
import jax.numpy as jnp
from jax import lax
from jax.experimental import pallas as pl
from jax.experimental.pallas import tpu as pltpu


# ---------------------------------------------------------------------------
# ALiBi slopes (same math as the PyTorch reference _get_alibi_slopes)
# ---------------------------------------------------------------------------
def get_alibi_slopes(total_num_heads: int) -> jnp.ndarray:
    closest_power_of_2 = 2 ** math.floor(math.log2(total_num_heads))
    base = 2 ** (-(2 ** (-(math.log2(closest_power_of_2) - 3))))
    powers = jnp.arange(1, 1 + closest_power_of_2, dtype=jnp.int32)
    slopes = jnp.power(jnp.float32(base), powers.astype(jnp.float32))
    if closest_power_of_2 != total_num_heads:
        extra_base = 2 ** (-(2 ** (-(math.log2(2 * closest_power_of_2) - 3))))
        num_remaining_heads = min(closest_power_of_2,
                                  total_num_heads - closest_power_of_2)
        extra_powers = jnp.arange(1, 1 + 2 * num_remaining_heads, 2,
                                  dtype=jnp.int32)
        slopes = jnp.concatenate(
            [slopes,
             jnp.power(jnp.float32(extra_base),
                       extra_powers.astype(jnp.float32))], axis=0)
    return slopes.astype(jnp.float32)


# ---------------------------------------------------------------------------
# Tiling helpers
# ---------------------------------------------------------------------------
def _round_up(x: int, m: int) -> int:
    return ((x + m - 1) // m) * m


def _pick_tile(dim: int, target: int, gran: int) -> int:
    """Largest tile <= target that divides `dim` and is a multiple of `gran`.

    Returns the full dim when dim <= target or when no such tile exists
    (a full-dim block is always a legal block shape)."""
    if dim <= target:
        return dim
    t = (target // gran) * gran
    while t >= gran:
        if dim % t == 0:
            return t
        t -= gran
    return dim


def _heads_per_block(num_heads: int, head_dim: int):
    """Smallest head group whose width (hb * head_dim) is lane-dense
    (multiple of 128); None if no such grouping exists (tiny models)."""
    for hb in range(1, num_heads + 1):
        if num_heads % hb == 0 and (hb * head_dim) % 128 == 0:
            return hb
    return None


def _use_bf16_exp() -> bool:
    """bf16 EUP exists on v6e/v7x; keep softmax exp in f32 on v5e and older."""
    try:
        kind = jax.devices()[0].device_kind.lower()
    except Exception:
        return False
    return not any(t in kind for t in ("v2", "v3", "v4", "v5"))


# ---------------------------------------------------------------------------
# Tiled linear: y = x @ w + b  (bf16 MXU feed, f32 VMEM accumulator,
# pipelined K reduction)
# ---------------------------------------------------------------------------
def _matmul_bias_kernel(x_ref, w_ref, b_ref, o_ref, acc_ref):
    @pl.when(pl.program_id(2) == 0)
    def _init():
        acc_ref[...] = jnp.zeros_like(acc_ref)

    # bf16 x bf16 -> f32 on the MXU; accumulate in f32 VMEM scratch.
    acc_ref[...] += jnp.dot(x_ref[...], w_ref[...],
                            preferred_element_type=jnp.float32)

    @pl.when(pl.program_id(2) == pl.num_programs(2) - 1)
    def _finalize():
        o_ref[...] = (acc_ref[...]
                      + b_ref[...].astype(jnp.float32)).astype(o_ref.dtype)


def linear(x, w, b, *, out_dtype=None, tm=512, tn=512, tk=512):
    M, K = x.shape
    K2, N = w.shape
    assert K == K2
    out_dtype = out_dtype or x.dtype
    # tm is a sublane dim (mult of 8 / full); tn, tk are lane dims
    # (mult of 128 / full).  Falls back to full dim for odd sizes.
    tm = _pick_tile(M, tm, 8)
    tn = _pick_tile(N, tn, 128)
    tk = _pick_tile(K, tk, 128)
    b2 = b.reshape(1, N)

    flops = 2 * M * N * K
    bytes_accessed = (M * K * x.dtype.itemsize + K * N * w.dtype.itemsize
                      + M * N * jnp.dtype(out_dtype).itemsize
                      + N * b.dtype.itemsize)

    return pl.pallas_call(
        _matmul_bias_kernel,
        out_shape=jax.ShapeDtypeStruct((M, N), out_dtype),
        grid=(M // tm, N // tn, K // tk),
        in_specs=[
            pl.BlockSpec((tm, tk), lambda i, j, k: (i, k)),
            pl.BlockSpec((tk, tn), lambda i, j, k: (k, j)),
            pl.BlockSpec((1, tn), lambda i, j, k: (0, j)),
        ],
        out_specs=pl.BlockSpec((tm, tn), lambda i, j, k: (i, j)),
        scratch_shapes=[pltpu.VMEM((tm, tn), jnp.float32)],
        compiler_params=pltpu.CompilerParams(
            dimension_semantics=("parallel", "parallel", "arbitrary"),
            vmem_limit_bytes=48 * 1024 * 1024),
        cost_estimate=pl.CostEstimate(flops=flops, transcendentals=0,
                                      bytes_accessed=bytes_accessed),
    )(x, w, b2)


# ---------------------------------------------------------------------------
# Flash-style causal self-attention with ALiBi bias.
# Grid = (head_groups, q_tiles, kv_tiles); kv is the innermost reduction axis
# with online-softmax state (m, l, acc) held in VMEM scratch.
# ---------------------------------------------------------------------------
def _flash_alibi_kernel(q_ref, k_ref, v_ref, slopes_ref, o_ref,
                        m_sc, l_sc, acc_sc, *,
                        scale, heads_per_block, head_dim, tq, tkv, exp_dtype):
    g = pl.program_id(0)      # head group
    qi = pl.program_id(1)     # query tile
    ki = pl.program_id(2)     # kv tile (innermost, reduction)

    @pl.when(ki == 0)
    def _init():
        m_sc[...] = jnp.full_like(m_sc, -jnp.inf)
        l_sc[...] = jnp.zeros_like(l_sc)
        acc_sc[...] = jnp.zeros_like(acc_sc)

    # KV tiles fully above the causal diagonal contribute nothing; their
    # K/V DMAs are also elided because the index_maps clamp the block index
    # there (repeated block index => Pallas skips the copy).
    @pl.when(ki * tkv <= qi * tq + (tq - 1))
    def _compute():
        q_pos = qi * tq + lax.broadcasted_iota(jnp.int32, (tq, 1), 0)
        k_pos = ki * tkv + lax.broadcasted_iota(jnp.int32, (1, tkv), 1)
        rel = (k_pos - q_pos).astype(jnp.float32)           # (tq, tkv)
        causal = k_pos <= q_pos                              # (tq, tkv)

        for h in range(heads_per_block):
            lo, hi = h * head_dim, (h + 1) * head_dim
            q = q_ref[:, lo:hi]
            k = k_ref[:, lo:hi]
            v = v_ref[:, lo:hi]
            slope = slopes_ref[g * heads_per_block + h]

            # q @ k^T (bf16 x bf16 -> f32 on the MXU); softmax stats in f32.
            s = lax.dot_general(q, k, (((1,), (1,)), ((), ())),
                                preferred_element_type=jnp.float32)
            s = s * scale + slope * rel
            s = jnp.where(causal, s, jnp.float32(-1e30))

            m_prev = m_sc[h]                                         # (tq, 1)
            m_new = jnp.maximum(m_prev, jnp.max(s, axis=-1, keepdims=True))
            alpha = jnp.exp(m_prev - m_new)
            # exp in bf16 on v6e/v7x (bf16 EUP), f32 on v5e; m/l/alpha stay f32.
            p = jnp.exp((s - m_new).astype(exp_dtype))
            l_sc[h] = alpha * l_sc[h] + jnp.sum(p.astype(jnp.float32),
                                                axis=-1, keepdims=True)
            # Per-head accumulator (full (tq, head_dim) store, no masked RMW
            # into a wider row).
            acc_sc[h] = (alpha * acc_sc[h]
                         + jnp.dot(p.astype(v.dtype), v,
                                   preferred_element_type=jnp.float32))
            m_sc[h] = m_new

    @pl.when(ki == pl.num_programs(2) - 1)
    def _finalize():
        for h in range(heads_per_block):
            lo, hi = h * head_dim, (h + 1) * head_dim
            inv_l = pl.reciprocal(l_sc[h], approx=True)              # (tq, 1)
            o_ref[:, lo:hi] = (acc_sc[h] * inv_l).astype(o_ref.dtype)


def alibi_attention(qkv, slopes, scale, num_heads, head_dim,
                    *, tq=512, tkv=512):
    """qkv: fused [T, 3*num_heads*head_dim]; returns [T, num_heads*head_dim]."""
    T, W3 = qkv.shape
    H = num_heads * head_dim
    assert W3 == 3 * H
    assert T % 8 == 0, "pad the token dim to a multiple of 8 before calling"

    hb = _heads_per_block(num_heads, head_dim)
    if hb is None:
        # TODO(synk): pad head_dim to 128 for sub-128 head widths; for now
        # fall back to a wrapper-side split so the block width equals the
        # full array width (only hit for tiny models / tests).
        q, k, v = jnp.split(qkv, 3, axis=-1)
        hb = num_heads
        num_groups = 1
        q_base, k_base, v_base = 0, 0, 0
        operands = (q, k, v)
    else:
        # Fused path: q/k/v are addressed directly inside the [T, 3H] QKV
        # tensor with column block offsets -> no jnp.split HBM round-trip.
        num_groups = num_heads // hb
        q_base, k_base, v_base = 0, num_groups, 2 * num_groups
        operands = (qkv, qkv, qkv)

    width = hb * head_dim
    tq = _pick_tile(T, tq, 8)
    tkv = _pick_tile(T, tkv, 8)

    def last_kv_block(i):
        # Last KV tile that intersects the causal region of q tile i.
        return ((i + 1) * tq - 1) // tkv

    def q_map(g, i, j):
        return (i, q_base + g)

    def k_map(g, i, j):
        return (jnp.minimum(j, last_kv_block(i)), k_base + g)

    def v_map(g, i, j):
        return (jnp.minimum(j, last_kv_block(i)), v_base + g)

    flops = 2 * num_heads * T * T * head_dim        # causal-halved qk + pv
    transcendentals = num_heads * T * T // 2
    bytes_accessed = 4 * T * H * qkv.dtype.itemsize

    kernel = functools.partial(
        _flash_alibi_kernel, scale=scale, heads_per_block=hb,
        head_dim=head_dim, tq=tq, tkv=tkv,
        exp_dtype=jnp.bfloat16 if _use_bf16_exp() else jnp.float32)

    return pl.pallas_call(
        kernel,
        out_shape=jax.ShapeDtypeStruct((T, H), qkv.dtype),
        grid=(num_groups, T // tq, T // tkv),
        in_specs=[
            pl.BlockSpec((tq, width), q_map),
            pl.BlockSpec((tkv, width), k_map),
            pl.BlockSpec((tkv, width), v_map),
            pl.BlockSpec(memory_space=pltpu.MemorySpace.SMEM),
        ],
        out_specs=pl.BlockSpec((tq, width), lambda g, i, j: (i, g)),
        scratch_shapes=[
            pltpu.VMEM((hb, tq, 1), jnp.float32),          # running max  m
            pltpu.VMEM((hb, tq, 1), jnp.float32),          # running sum  l
            pltpu.VMEM((hb, tq, head_dim), jnp.float32),   # per-head acc
        ],
        compiler_params=pltpu.CompilerParams(
            dimension_semantics=("parallel", "parallel", "arbitrary"),
            vmem_limit_bytes=32 * 1024 * 1024),
        cost_estimate=pl.CostEstimate(flops=flops,
                                      transcendentals=transcendentals,
                                      bytes_accessed=bytes_accessed),
    )(*operands, slopes)


# ---------------------------------------------------------------------------
# BloomAttention forward (glue in plain JAX, hot paths in Pallas)
# ---------------------------------------------------------------------------
def bloom_attention_forward(hidden_states, params, num_heads, head_dim):
    T, hidden = hidden_states.shape
    scale = head_dim ** (-0.5)
    out_dtype = hidden_states.dtype

    # Pad the token dim so every tile obeys the (8, 128) sublane constraint
    # (padded query rows are sliced off; padded key rows are causally masked).
    t_align = 8 if T <= 256 else 128
    T_pad = _round_up(T, t_align)
    if T_pad != T:
        hidden_states = jnp.pad(hidden_states, ((0, T_pad - T), (0, 0)))

    # Feed the MXU bf16 (accumulation stays f32 inside the kernels); casting
    # in the wrapper also halves activation/weight HBM traffic in the matmuls.
    x = hidden_states.astype(jnp.bfloat16)
    w_qkv = params["w_qkv"].astype(jnp.bfloat16)
    w_dense = params["w_dense"].astype(jnp.bfloat16)

    # QKV projection (ColumnParallelLinear, tp=1) -> fused [T, 3H] in bf16.
    qkv = linear(x, w_qkv, params["b_qkv"], out_dtype=jnp.bfloat16)

    # Flash attention with ALiBi; reads q/k/v straight out of the fused qkv.
    attn = alibi_attention(qkv, params["alibi_slopes"], scale,
                           num_heads, head_dim)                     # [T, H]

    # Output projection (RowParallelLinear, tp=1)
    out = linear(attn, w_dense, params["b_dense"], out_dtype=out_dtype)
    return out[:T] if T_pad != T else out


# ---------------------------------------------------------------------------
# Pure-JAX (f32) reference for correctness check
# ---------------------------------------------------------------------------
def reference_forward(hidden_states, params, num_heads, head_dim):
    T, hidden = hidden_states.shape
    scale = head_dim ** (-0.5)
    qkv = hidden_states @ params["w_qkv"] + params["b_qkv"]
    q, k, v = jnp.split(qkv, 3, axis=-1)
    q = jnp.transpose(q.reshape(T, num_heads, head_dim), (1, 0, 2))
    k = jnp.transpose(k.reshape(T, num_heads, head_dim), (1, 0, 2))
    v = jnp.transpose(v.reshape(T, num_heads, head_dim), (1, 0, 2))
    s = jnp.einsum("hqd,hkd->hqk", q, k) * scale
    qi = jnp.arange(T)[:, None]
    kj = jnp.arange(T)[None, :]
    bias = params["alibi_slopes"][:, None, None] * (kj - qi)[None].astype(
        jnp.float32)
    s = s + bias
    s = jnp.where((kj <= qi)[None], s, -1e30)
    p = jax.nn.softmax(s, axis=-1)
    o = jnp.einsum("hqk,hkd->hqd", p, v)
    o = jnp.transpose(o, (1, 0, 2)).reshape(T, hidden)
    return o @ params["w_dense"] + params["b_dense"]


if __name__ == "__main__":
    # Small BloomConfig-like setup: hidden_size=32, n_head=4 -> head_dim=8.
    hidden_size = 32
    num_heads = 4
    head_dim = hidden_size // num_heads
    num_tokens = 8  # flattened batch*seq

    key = jax.random.PRNGKey(0)
    k_x, k_wqkv, k_bqkv, k_wd, k_bd = jax.random.split(key, 5)

    hidden_states = jax.random.normal(k_x, (num_tokens, hidden_size),
                                      dtype=jnp.float32)

    params = {
        "w_qkv": 0.02 * jax.random.normal(
            k_wqkv, (hidden_size, 3 * hidden_size), dtype=jnp.float32),
        "b_qkv": 0.02 * jax.random.normal(
            k_bqkv, (3 * hidden_size,), dtype=jnp.float32),
        "w_dense": 0.02 * jax.random.normal(
            k_wd, (hidden_size, hidden_size), dtype=jnp.float32),
        "b_dense": 0.02 * jax.random.normal(
            k_bd, (hidden_size,), dtype=jnp.float32),
        "alibi_slopes": get_alibi_slopes(num_heads),
    }

    out = bloom_attention_forward(hidden_states, params, num_heads, head_dim)
    out = jax.block_until_ready(out)

    ref = reference_forward(hidden_states, params, num_heads, head_dim)
    assert out.shape == (num_tokens, hidden_size)
    # Kernels feed the MXU bf16 (f32 accumulation), so compare at bf16-level
    # tolerance against the f32 reference.
    assert jnp.allclose(out.astype(jnp.float32), ref,
                        atol=3e-3, rtol=3e-2), "mismatch vs reference"

    print("KERNEL_OK")
</pallas_src>

<mosaic_0001>
module attributes {stable_mosaic.version = 11 : i64} {
  func.func @_matmul_bias_kernel(%arg0: i32, %arg1: i32, %arg2: i32, %arg3: memref<8x32xbf16, #tpu.memory_space<vmem>>, %arg4: memref<32x96xbf16, #tpu.memory_space<vmem>>, %arg5: memref<1x96xf32, #tpu.memory_space<vmem>>, %arg6: memref<8x96xbf16, #tpu.memory_space<vmem>>, %arg7: memref<8x96xf32, #tpu.memory_space<vmem>>) attributes {dimension_semantics = [#tpu.dimension_semantics<parallel>, #tpu.dimension_semantics<parallel>, #tpu.dimension_semantics<arbitrary>], iteration_bounds = array<i64: 1, 1, 1>, scalar_prefetch = 0 : i64, scratch_operands = 1 : i64, tpu.core_type = #tpu.core_type<tc>, window_params = [{transform_indices = @transform_0, window_bounds = array<i64: 8, 32>}, {transform_indices = @transform_1, window_bounds = array<i64: 32, 96>}, {transform_indices = @transform_2, window_bounds = array<i64: 1, 96>}, {transform_indices = @transform_3, window_bounds = array<i64: 8, 96>}]} {
    %c0_i32 = arith.constant 0 : i32
    %0 = arith.cmpi eq, %arg2, %c0_i32 : i32
    %1 = arith.extui %0 : i1 to i32
    %c0_i32_0 = arith.constant 0 : i32
    %2 = arith.cmpi ne, %1, %c0_i32_0 : i32
    scf.if %2 {
      %cst_10 = arith.constant 0.000000e+00 : f32
      %12 = vector.broadcast %cst_10 : f32 to vector<8x96xf32>
      %c0_11 = arith.constant 0 : index
      %c0_12 = arith.constant 0 : index
      %13 = vector.load %arg7[%c0_11, %c0_12] : memref<8x96xf32, #tpu.memory_space<vmem>>, vector<8x96xf32>
      tpu.vector_store %arg7[%c0_11, %c0_12], %12 {strides = array<i32>} : memref<8x96xf32, #tpu.memory_space<vmem>>, vector<8x96xf32>,
    } else {
    }
    %c0 = arith.constant 0 : index
    %c0_1 = arith.constant 0 : index
    %3 = vector.load %arg7[%c0, %c0_1] : memref<8x96xf32, #tpu.memory_space<vmem>>, vector<8x96xf32>
    %c0_2 = arith.constant 0 : index
    %c0_3 = arith.constant 0 : index
    %4 = vector.load %arg3[%c0_2, %c0_3] : memref<8x32xbf16, #tpu.memory_space<vmem>>, vector<8x32xbf16>
    %c0_4 = arith.constant 0 : index
    %c0_5 = arith.constant 0 : index
    %5 = vector.load %arg4[%c0_4, %c0_5] : memref<32x96xbf16, #tpu.memory_space<vmem>>, vector<32x96xbf16>
    %cst = arith.constant dense<0.000000e+00> : vector<8x96xf32>
    %6 = tpu.matmul %4, %5, %cst {dimension_numbers = #tpu.dot_dimension_numbers<[1], [0], [0], [1], [0, 0, 1, 1], [], []>} : vector<8x32xbf16>, vector<32x96xbf16>, vector<8x96xf32> -> vector<8x96xf32>
    %7 = arith.addf %3, %6 : vector<8x96xf32>
    %c0_6 = arith.constant 0 : index
    %c0_7 = arith.constant 0 : index
    %8 = vector.load %arg7[%c0_6, %c0_7] : memref<8x96xf32, #tpu.memory_space<vmem>>, vector<8x96xf32>
    tpu.vector_store %arg7[%c0_6, %c0_7], %7 {strides = array<i32>} : memref<8x96xf32, #tpu.memory_space<vmem>>, vector<8x96xf32>,
    %c0_i32_8 = arith.constant 0 : i32
    %9 = arith.cmpi eq, %arg2, %c0_i32_8 : i32
    %10 = arith.extui %9 : i1 to i32
    %c0_i32_9 = arith.constant 0 : i32
    %11 = arith.cmpi ne, %10, %c0_i32_9 : i32
    scf.if %11 {
      %c0_10 = arith.constant 0 : index
      %c0_11 = arith.constant 0 : index
      %12 = vector.load %arg7[%c0_10, %c0_11] : memref<8x96xf32, #tpu.memory_space<vmem>>, vector<8x96xf32>
      %c0_12 = arith.constant 0 : index
      %c0_13 = arith.constant 0 : index
      %13 = vector.load %arg5[%c0_12, %c0_13] : memref<1x96xf32, #tpu.memory_space<vmem>>, vector<1x96xf32>
      %14 = vector.broadcast %13 : vector<1x96xf32> to vector<8x96xf32>
      %15 = arith.addf %12, %14 : vector<8x96xf32>
      %16 = arith.truncf %15 : vector<8x96xf32> to vector<8x96xbf16>
      %c0_14 = arith.constant 0 : index
      %c0_15 = arith.constant 0 : index
      %17 = vector.load %arg6[%c0_14, %c0_15] : memref<8x96xbf16, #tpu.memory_space<vmem>>, vector<8x96xbf16>
      tpu.vector_store %arg6[%c0_14, %c0_15], %16 {strides = array<i32>} : memref<8x96xbf16, #tpu.memory_space<vmem>>, vector<8x96xbf16>,
    } else {
    }
    return
  }
  func.func @transform_0(%arg0: i32, %arg1: i32, %arg2: i32) -> (i32, i32) {
    %c0_i32 = arith.constant 0 : i32
    return %arg0, %arg2 : i32, i32
  }
  func.func @transform_1(%arg0: i32, %arg1: i32, %arg2: i32) -> (i32, i32) {
    %c0_i32 = arith.constant 0 : i32
    return %arg2, %arg1 : i32, i32
  }
  func.func @transform_2(%arg0: i32, %arg1: i32, %arg2: i32) -> (i32, i32) {
    %c0_i32 = arith.constant 0 : i32
    %c0_i32_0 = arith.constant 0 : i32
    return %c0_i32, %arg1 : i32, i32
  }
  func.func @transform_3(%arg0: i32, %arg1: i32, %arg2: i32) -> (i32, i32) {
    %c0_i32 = arith.constant 0 : i32
    return %arg0, %arg1 : i32, i32
  }
}

</mosaic_0001>

<bundles_post_ra>
// kernel: tpu_custom_call.1
= control target key start
LH: loop header
LB: loop body
LE: loop exit
PB: predicated region body
PF: predicated region fallthrough
CT: control target
= control target key end

     0   :  { %8 = vsyncpa [#allocation4], 0  ;;  %s315_s0 = inlined_call_operand.hbm [shape: bf16[8,32], index: 0, kind: input, shape index: {}]   ;;  %s316_s1 = inlined_call_operand.hbm [shape: bf16[32,96], index: 1, kind: input, shape index: {}]   ;;  %s317_s2 = inlined_call_operand.vmem [shape: f32[1,96], index: 2, kind: input, shape index: {}]   ;;  %s318_s3 = inlined_call_operand.hbm [shape: bf16[8,96], index: 3, kind: output, shape index: {}]  }
   0x1   :  { %9 = vsyncpa [#allocation7], 0 }
   0x2   :  { %10 = vsyncpa [#allocation5], 0  ;;  %s240_s12 = smov [#allocation3]   ;;  %s241_s14 = smov [#allocation6]  }
   0x3   :  { %s17_s13 = sshll.u32 %s240_s12, 4  ;;  %s26_s15 = sshll.u32 %s241_s14, 4  ;;  %s18_s13 = int_to_ptr.vmem [resolvable:$true] %s17_s13  ;;  %s267_s15 = int_to_ptr.vmem [resolvable:$true] %s26_s15 }
   0x4   :  { %s168_s18 = scalar_lea.hbm %s315_s0, 64 }
   0x5   :  { %p169_p0 = scmp.ne.s32.totalorder %s315_s0, %s168_s18  ;;  %p172_p1 = scmp.lt.u32.totalorder %s168_s18, %s315_s0 }
   0x7   :  { %p174_p2 = pnand %p172_p1, %p169_p0 }
   0x9   :  { %177 = shalt.err (!%p174_p2)
}
   0xa   :  { %s178_s23 = scalar_lea.vmem %s18_s13, 64  ;;  %p183_p4 = scmp.lt.s32.totalorder %s18_s13, %s18_s13 }
   0xb   :  { %p179_p3 = scmp.ne.s32.totalorder %s18_s13, %s178_s23  ;;  %p184_p5 = scmp.lt.s32.totalorder %s178_s23, %s178_s23 }
   0xd   :  { %p185_p6 = por %p184_p5, %p183_p4 }
   0xf   :  { %p186_p7 = pnand %p185_p6, %p179_p3 }
  0x11   :  { %189 = shalt.err (!%p186_p7)
}
  0x12   :  { %20 = dma.hbm_to_vmem [thread:$0]  %s315_s0, 64, %s18_s13, [#allocation4]  }
  0x13   :  { %s190_s28 = scalar_lea.hbm %s316_s1, 256 }
  0x14   :  { %p191_p8 = scmp.ne.s32.totalorder %s316_s1, %s190_s28  ;;  %p194_p9 = scmp.lt.u32.totalorder %s190_s28, %s316_s1 }
  0x16   :  { %p196_p10 = pnand %p194_p9, %p191_p8 }
  0x18   :  { %199 = shalt.err (!%p196_p10)
}
  0x19   :  { %s200_s6 = scalar_lea.vmem %s267_s15, 256  ;;  %p205_p12 = scmp.lt.s32.totalorder %s267_s15, %s267_s15 }
  0x1a   :  { %p201_p11 = scmp.ne.s32.totalorder %s267_s15, %s200_s6  ;;  %p206_p13 = scmp.lt.s32.totalorder %s200_s6, %s200_s6 }
  0x1c   :  { %p207_p0 = por %p206_p13, %p205_p12 }
  0x1e   :  { %p208_p1 = pnand %p207_p0, %p201_p11 }
  0x20   :  { %211 = shalt.err (!%p208_p1)
}
  0x21   :  { %s242_s0 = smov 64   ;;  %s243_s7 = smov 4  }
  0x22   :  { %32 = dma.hbm_to_vmem [thread:$0]  %s316_s1, 256, %s267_s15, [#allocation7], %s242_s0, %s242_s0, %s243_s7  }
  0x23   :  { %234 = dma.done.wait [#allocation4], 64  }
  0x24   :  { %235 = vsyncadd [#allocation4], 4294967232 }
  0x25   :  { %236 = dma.done.wait [#allocation7], 256  }
  0x26   :  { %237 = vsyncadd [#allocation7], 4294967040  ;;  %vm46_vm0 = vcmask 785408   ;;  %v244_v0 = vmov 0.0   ;;  %vm245_vm1 = vmmov 0   ;;  %v166_v1 = vld [vmem:[#allocation6] sm:$0xff]  }
  0x27   :  { %47 = vst.msk [vmem:[#allocation2] sm:$0xff] %vm46_vm0, %v244_v0  ;;  %151 = vmatprep.subr.bf16.mxu0 %v244_v0  ;;  %155 = vmatprep.mubr.msk.bf16.mxu0 %vm245_vm1, %v244_v0  ;;  %v167_v2 = vld [vmem:[#allocation6 + $0x8] sm:$0xff]   ;;  %v49_v3 = vld [vmem:[#allocation3] sm:$0xf]  ;;  %vm66_vm2 = vcmask 261120   ;;  %s246_s11 = smov [#allocation8]  }
  0x28   :  { %152 = vmatpush3.bf16.msra.mxu0 %v166_v1  ;;  %v147_v10 = vld [vmem:[%s317_s2] ss:$0 sm:$0xff]  ;;  %s134_s12 = sshll.u32 %s246_s11, 4  ;;  %vm126_vm3 = vcmask 781312   ;;  %s135_s12 = int_to_ptr.vmem [resolvable:$true] %s134_s12 }
  0x29   :  { %153 = vmatprep.subr.bf16.mxu0 %v244_v0  ;;  %s212_s13 = scalar_lea.vmem %s135_s12, 64  ;;  %p217_p3 = scmp.lt.s32.totalorder %s135_s12, %s135_s12 }
  0x2a   :  { %p213_p2 = scmp.ne.s32.totalorder %s135_s12, %s212_s13  ;;  %p218_p4 = scmp.lt.s32.totalorder %s212_s13, %s212_s13 }
  0x2c   :  { %154 = vmatpush3.bf16.msra.mxu0 %v167_v2  ;;  %p219_p5 = por %p218_p4, %p217_p3 }
  0x2e   :  { %v48_v4 = vld [vmem:[#allocation2] sm:$0xff]  ;;  %p220_p6 = pnand %p219_p5, %p213_p2 }
  0x2f   :  { %156 = vmatmul.mubr.msk.bf16.vlgmr.msra.gmra.mrb[0].mxu0 %vm66_vm2, %v49_v3 }
 0x102   :  { %v104_v5 = vpop.f32.mrb[0].mxu0 }
 0x103   :  { %v110_v6 = vadd.f32 %v104_v5, %v48_v4  ;;  %v157_v7 = vpop.f32.mrb[1].mxu0 }
 0x104   :  { %v107_v8 = vpop.f32.mrb[2].mxu0 }
 0x105   :  { %112 = vst.msk [vmem:[#allocation2] sm:$0xff] %vm46_vm0, %v110_v6  ;;  %v158_v9 = vpop.f32.mrb[3].mxu0 }
 0x10c   :  { %v116_v11 = vld [vmem:[#allocation2] sm:$0xff] }
 0x10d   :  { %v124_v12 = vadd.f32 %v147_v10, %v116_v11 }
 0x10f   :  { %v125_v13 = vpack.c.bf16 %v124_v12, %v124_v12 }
 0x111   :  { %127 = vst.msk [vmem:[#allocation8] sm:$0xf] %vm126_vm3, %v125_v13 }
 0x112   :  { %223 = shalt.err (!%p220_p6)
}
 0x113   :  { %s224_s16 = scalar_lea.hbm %s318_s3, 64 }
 0x114   :  { %p225_p7 = scmp.ne.s32.totalorder %s318_s3, %s224_s16  ;;  %p228_p8 = scmp.lt.u32.totalorder %s224_s16, %s318_s3 }
 0x116   :  { %p230_p9 = pnand %p228_p8, %p225_p7 }
 0x118   :  { %233 = shalt.err (!%p230_p9)
}
 0x119   :  { %137 = dma.vmem_to_hbm [thread:$0]  %s135_s12, 64, %s318_s3, [#allocation5]  }
 0x11a   :  { %238 = dma.done.wait [#allocation5], 64  }
 0x11b   :  { %239 = vsyncadd [#allocation5], 4294967232 }
 0x11c   :  { %141 = vsyncpa [#allocation4], 1 }
 0x11d   :  { %142 = vsyncpa [#allocation7], 1 }
 0x11e   :  { %143 = vsyncpa [#allocation5], 1 }

</bundles_post_ra>
